<compile_context>
chip_gen: v6e
topology: v6e:2x2x1
jax: 0.10.0
libtpu: 0.0.40
codegen_flags: <defaults>
</compile_context>

<pallas_src>
import functools

import numpy as np
import jax
import jax.numpy as jnp
from jax import lax
from jax.experimental import pallas as pl
from jax.experimental.pallas import tpu as pltpu


def up_block_kernel(w1t_ref, b1_ref, mt_ref, w3u_ref, w3s_ref, b3_ref,
                    m_ref, x_ref, skip_ref, o_ref, *, HW, Wo, BB):
    """One grid step = BB images, laid side-by-side along the lane axis."""
    Cout = o_ref.shape[1]
    BHW = BB * HW

    w1t = w1t_ref[...]                           # (Cout, Cin)
    b1 = b1_ref[...]                             # (Cout, 1)
    mt = mt_ref[...]                             # (Hi*Wi, HW)

    # --- 1) 1x1 conv FIRST (contract channels before spatial expansion;
    #        exact because the interp matrix is row-stochastic, so the bias
    #        passes through), then
    # --- 2) bilinear upsample (align_corners=True) as one right-matmul
    #        per image; results concatenated along lanes -> (Cout, BB*HW).
    ups = []
    for b in range(BB):
        y1 = jnp.dot(w1t, x_ref[b], preferred_element_type=jnp.float32) + b1
        ups.append(jnp.dot(y1, mt, preferred_element_type=jnp.float32))
    y_up = ups[0] if BB == 1 else jnp.concatenate(ups, axis=1)

    sk = (skip_ref[0] if BB == 1 else
          jnp.concatenate([skip_ref[b] for b in range(BB)], axis=1))

    # --- 3) 3x3 conv (padding=1) as 9 accumulated per-tap matmuls -----------
    # Tap (dy, dx) of the zero-padded image is a static lane roll of the flat
    # image; the precomputed {0,1} mask zeroes output positions whose source
    # pixel is outside its own image (this also kills any cross-image leakage
    # from rolling the BB-wide lane concat).  Up-conv and skip channels are
    # separate matmuls summed into the accumulator -> no channel concat.
    acc = jnp.zeros((Cout, BHW), jnp.float32)
    for dy in range(3):
        for dx in range(3):
            k = (dy - 1) * Wo + (dx - 1)          # flat lane offset of tap
            if k == 0:
                up_t, sk_t = y_up, sk
            else:
                s = (-k) % BHW
                up_t = pltpu.roll(y_up, s, axis=1)   # XLU lane rotation
                sk_t = pltpu.roll(sk, s, axis=1)
            t = dy * 3 + dx
            tap = (jnp.dot(w3u_ref[t], up_t, preferred_element_type=jnp.float32) +
                   jnp.dot(w3s_ref[t], sk_t, preferred_element_type=jnp.float32))
            if dy == 1 and dx == 1:
                acc = acc + tap                   # center tap: always valid
            else:
                acc = acc + tap * m_ref[t]        # (1, BHW) {0,1} mask
    conv = acc + b3_ref[...]                      # (Cout, BB*HW)

    # --- 4) InstanceNorm2d (affine=False, eps=1e-5, biased var) per image ----
    #        + LeakyReLU(0.2).  Two-pass centered variance for stability.
    inv_n = 1.0 / HW
    for b in range(BB):
        yb = conv[:, b * HW:(b + 1) * HW]         # static lane slice
        mean = jnp.sum(yb, axis=1, keepdims=True) * inv_n
        cen = yb - mean
        var = jnp.sum(cen * cen, axis=1, keepdims=True) * inv_n
        yn = cen * lax.rsqrt(var + 1e-5)
        o_ref[b] = jnp.maximum(yn, 0.2 * yn).astype(o_ref.dtype)


def _interp_matrix_np(out_size, in_size):
    """Row-stochastic bilinear (align_corners=True) interp matrix (numpy)."""
    if out_size == 1:
        src = np.zeros((1,), np.float32)
    else:
        src = (np.arange(out_size, dtype=np.float32) *
               np.float32((in_size - 1) / (out_size - 1)))
    i0 = np.clip(np.floor(src).astype(np.int64), 0, in_size - 1)
    i1 = np.minimum(i0 + 1, in_size - 1)
    w1 = (src - i0).astype(np.float32)
    w0 = np.float32(1.0) - w1
    m = np.zeros((out_size, in_size), np.float32)
    rows = np.arange(out_size)
    m[rows, i0] += w0
    m[rows, i1] += w1
    return m


def _border_masks_np(Ho, Wo, BB):
    """(9, 1, BB*Ho*Wo) {0,1} f32 masks: validity of each 3x3 tap source."""
    h = np.arange(Ho)[:, None]
    w = np.arange(Wo)[None, :]
    masks = []
    for dy in range(3):
        for dx in range(3):
            ok = ((h + dy - 1 >= 0) & (h + dy - 1 < Ho) &
                  (w + dx - 1 >= 0) & (w + dx - 1 < Wo))
            m = ok.astype(np.float32).reshape(1, Ho * Wo)
            masks.append(np.tile(m, (1, BB)))
    return np.stack(masks, axis=0)                # (9, 1, BB*HW)


def _pick_batch_block(N):
    """Images per grid step: fill work per step (<=8) but keep >=2 steps so
    v7x can shard the 'parallel' batch axis across its 2 TensorCores."""
    bb = 1
    for cand in range(2, min(8, N) + 1):
        if N % cand == 0 and N // cand >= 2:
            bb = cand
    return bb


def up_block_forward(x, skip, w1, b1, w3, b3):
    """x: (N, Cin, Hi, Wi), skip: (N, Cs, Ho, Wo); NCHW in / NCHW out."""
    N, Cin, Hi, Wi = x.shape
    _, Cs, Ho, Wo = skip.shape
    Cout = w1.shape[1]
    C = Cout + Cs
    HW = Ho * Wo
    BB = _pick_batch_block(N)
    grid = N // BB

    # Shape-only constants built with numpy at trace time (no XLA prologue).
    Ah = _interp_matrix_np(Ho, Hi)
    Aw = _interp_matrix_np(Wo, Wi)
    mt = jnp.asarray(np.kron(Ah, Aw).T.copy())            # (Hi*Wi, Ho*Wo)
    masks = jnp.asarray(_border_masks_np(Ho, Wo, BB))     # (9, 1, BB*HW)

    # Weight prep (tiny one-time ops; free reshapes on activations only).
    w1t = w1.T                                            # (Cout, Cin)
    b1c = b1.reshape(Cout, 1)
    # 3x3 weights per tap, split per input source (up-conv vs skip) so the
    # kernel does per-tap accumulation with no channel concat / im2col slab.
    w3t = jnp.transpose(w3, (0, 1, 3, 2)).reshape(9, Cout, C)   # (tap, out, in)
    w3u = w3t[:, :, :Cout]                                # (9, Cout, Cout)
    w3s = w3t[:, :, Cout:]                                # (9, Cout, Cs)
    b3c = b3.reshape(Cout, 1)

    xf = x.reshape(N, Cin, Hi * Wi)
    sf = skip.reshape(N, Cs, HW)

    kernel = functools.partial(up_block_kernel, HW=HW, Wo=Wo, BB=BB)
    out = pl.pallas_call(
        kernel,
        out_shape=jax.ShapeDtypeStruct((N, Cout, HW), jnp.float32),
        grid_spec=pltpu.PrefetchScalarGridSpec(
            num_scalar_prefetch=0,
            grid=(grid,),
            in_specs=[
                # Batch-invariant operands (block index never changes, so
                # Pallas DMAs them once; their double buffers are ~80 KiB).
                pl.BlockSpec((Cout, Cin), lambda n: (0, 0)),           # w1^T
                pl.BlockSpec((Cout, 1), lambda n: (0, 0)),             # b1
                pl.BlockSpec((Hi * Wi, HW), lambda n: (0, 0)),         # interp
                pl.BlockSpec((9, Cout, Cout), lambda n: (0, 0, 0)),    # w3 (up)
                pl.BlockSpec((9, Cout, Cs), lambda n: (0, 0, 0)),      # w3 (skip)
                pl.BlockSpec((Cout, 1), lambda n: (0, 0)),             # b3
                pl.BlockSpec((9, 1, BB * HW), lambda n: (0, 0, 0)),    # masks
                # Per-step batch blocks.
                pl.BlockSpec((BB, Cin, Hi * Wi), lambda n: (n, 0, 0)),  # x
                pl.BlockSpec((BB, Cs, HW), lambda n: (n, 0, 0)),        # skip
            ],
            out_specs=pl.BlockSpec((BB, Cout, HW), lambda n: (n, 0, 0)),
        ),
        compiler_params=pltpu.CompilerParams(
            dimension_semantics=("parallel",),        # batch across TCs (v7x)
            vmem_limit_bytes=32 * 1024 * 1024),
    )(w1t, b1c, mt, w3u, w3s, b3c, masks, xf, sf)

    return out.reshape(N, Cout, Ho, Wo)


def ref_forward(x, skip, w1, b1, w3, b3):
    """Pure-JAX reference with identical semantics (NCHW in/out)."""
    _, _, Hi, Wi = x.shape
    _, _, Ho, Wo = skip.shape
    Ah = jnp.asarray(_interp_matrix_np(Ho, Hi))
    Aw = jnp.asarray(_interp_matrix_np(Wo, Wi))
    x_up = jnp.einsum('hH,wW,ncHW->nchw', Ah, Aw, x)
    x_up_conv = jnp.einsum('nchw,cd->ndhw', x_up, w1) + b1[None, :, None, None]
    cat = jnp.concatenate([x_up_conv, skip], axis=1)
    w_oihw = jnp.transpose(w3, (3, 2, 0, 1))
    y = lax.conv_general_dilated(cat, w_oihw, (1, 1), ((1, 1), (1, 1)),
                                 dimension_numbers=('NCHW', 'OIHW', 'NCHW'))
    y = y + b3[None, :, None, None]
    mean = y.mean(axis=(2, 3), keepdims=True)
    var = ((y - mean) ** 2).mean(axis=(2, 3), keepdims=True)
    y = (y - mean) / jnp.sqrt(var + 1e-5)
    return jnp.where(y > 0, y, 0.2 * y)


if __name__ == "__main__":
    # UpBlock(in_channels=8, out_channels=4, dim=2, normalization=True)
    N, Cin, Cout = 2, 8, 4
    Hi = Wi = 8          # low-res input spatial
    Ho = Wo = 16         # skip spatial (upsample target)
    Cs = Cin - Cout      # skip channels so the concat has `in_channels` chans

    key = jax.random.PRNGKey(0)
    k1, k2, k3, k4, k5, k6 = jax.random.split(key, 6)
    x = jax.random.normal(k1, (N, Cin, Hi, Wi), jnp.float32)
    skip = jax.random.normal(k2, (N, Cs, Ho, Wo), jnp.float32)
    # Deterministic synthetic parameters (kernel layouts: w1 (Cin, Cout),
    # w3 (kh, kw, Cin_cat, Cout)), equivalent to torch weights permuted.
    w1 = jax.random.normal(k3, (Cin, Cout), jnp.float32) * 0.1
    b1 = jax.random.normal(k4, (Cout,), jnp.float32) * 0.1
    w3 = jax.random.normal(k5, (3, 3, Cin, Cout), jnp.float32) * 0.1
    b3 = jax.random.normal(k6, (Cout,), jnp.float32) * 0.1

    out = up_block_forward(x, skip, w1, b1, w3, b3)
    out = jax.block_until_ready(out)

    ref = ref_forward(x, skip, w1, b1, w3, b3)
    np.testing.assert_allclose(np.asarray(out), np.asarray(ref),
                               rtol=2e-4, atol=2e-4)
    print("KERNEL_OK")
</pallas_src>

<mosaic_0001>
module attributes {stable_mosaic.version = 11 : i64} {
  func.func @up_block_kernel(%arg0: i32, %arg1: memref<4x8xf32, #tpu.memory_space<vmem>>, %arg2: memref<4x1xf32, #tpu.memory_space<vmem>>, %arg3: memref<64x256xf32, #tpu.memory_space<vmem>>, %arg4: memref<9x4x4xf32, #tpu.memory_space<vmem>>, %arg5: memref<9x4x4xf32, #tpu.memory_space<vmem>>, %arg6: memref<4x1xf32, #tpu.memory_space<vmem>>, %arg7: memref<9x1x256xf32, #tpu.memory_space<vmem>>, %arg8: memref<1x8x64xf32, #tpu.memory_space<vmem>>, %arg9: memref<1x4x256xf32, #tpu.memory_space<vmem>>, %arg10: memref<1x4x256xf32, #tpu.memory_space<vmem>>) attributes {dimension_semantics = [#tpu.dimension_semantics<parallel>], iteration_bounds = array<i64: 2>, scalar_prefetch = 0 : i64, scratch_operands = 0 : i64, tpu.core_type = #tpu.core_type<tc>, window_params = [{pipeline_mode = #tpu.pipeline_mode<synchronous>, transform_indices = @transform_0, window_bounds = array<i64: 4, 8>}, {pipeline_mode = #tpu.pipeline_mode<synchronous>, transform_indices = @transform_1, window_bounds = array<i64: 4, 1>}, {pipeline_mode = #tpu.pipeline_mode<synchronous>, transform_indices = @transform_2, window_bounds = array<i64: 64, 256>}, {pipeline_mode = #tpu.pipeline_mode<synchronous>, transform_indices = @transform_3, window_bounds = array<i64: 9, 4, 4>}, {pipeline_mode = #tpu.pipeline_mode<synchronous>, transform_indices = @transform_4, window_bounds = array<i64: 9, 4, 4>}, {pipeline_mode = #tpu.pipeline_mode<synchronous>, transform_indices = @transform_5, window_bounds = array<i64: 4, 1>}, {pipeline_mode = #tpu.pipeline_mode<synchronous>, transform_indices = @transform_6, window_bounds = array<i64: 9, 1, 256>}, {transform_indices = @transform_7, window_bounds = array<i64: 1, 8, 64>}, {transform_indices = @transform_8, window_bounds = array<i64: 1, 4, 256>}, {transform_indices = @transform_9, window_bounds = array<i64: 1, 4, 256>}]} {
    %c0 = arith.constant 0 : index
    %c0_0 = arith.constant 0 : index
    %0 = vector.load %arg1[%c0, %c0_0] : memref<4x8xf32, #tpu.memory_space<vmem>>, vector<4x8xf32>
    %c0_1 = arith.constant 0 : index
    %c0_2 = arith.constant 0 : index
    %1 = vector.load %arg2[%c0_1, %c0_2] : memref<4x1xf32, #tpu.memory_space<vmem>>, vector<4x1xf32>
    %c0_3 = arith.constant 0 : index
    %c0_4 = arith.constant 0 : index
    %2 = vector.load %arg3[%c0_3, %c0_4] : memref<64x256xf32, #tpu.memory_space<vmem>>, vector<64x256xf32>
    %c0_5 = arith.constant 0 : index
    %c0_6 = arith.constant 0 : index
    %c0_7 = arith.constant 0 : index
    %3 = vector.load %arg8[%c0_5, %c0_6, %c0_7] : memref<1x8x64xf32, #tpu.memory_space<vmem>>, vector<1x8x64xf32>
    %4 = vector.shape_cast %3 : vector<1x8x64xf32> to vector<8x64xf32>
    %cst = arith.constant dense<0.000000e+00> : vector<4x64xf32>
    %5 = tpu.matmul %0, %4, %cst {dimension_numbers = #tpu.dot_dimension_numbers<[1], [0], [0], [1], [0, 0, 1, 1], [], []>} : vector<4x8xf32>, vector<8x64xf32>, vector<4x64xf32> -> vector<4x64xf32>
    %6 = vector.broadcast %1 : vector<4x1xf32> to vector<4x64xf32>
    %7 = arith.addf %5, %6 : vector<4x64xf32>
    %cst_8 = arith.constant dense<0.000000e+00> : vector<4x256xf32>
    %8 = tpu.matmul %7, %2, %cst_8 {dimension_numbers = #tpu.dot_dimension_numbers<[1], [0], [0], [1], [0, 0, 1, 1], [], []>} : vector<4x64xf32>, vector<64x256xf32>, vector<4x256xf32> -> vector<4x256xf32>
    %c0_9 = arith.constant 0 : index
    %c0_10 = arith.constant 0 : index
    %c0_11 = arith.constant 0 : index
    %9 = vector.load %arg9[%c0_9, %c0_10, %c0_11] : memref<1x4x256xf32, #tpu.memory_space<vmem>>, vector<1x4x256xf32>
    %10 = vector.shape_cast %9 : vector<1x4x256xf32> to vector<4x256xf32>
    %cst_12 = arith.constant 0.000000e+00 : f32
    %11 = vector.broadcast %cst_12 : f32 to vector<4x256xf32>
    %c17_i32 = arith.constant 17 : i32
    %12 = tpu.dynamic_rotate %8 by %c17_i32 dim 1 : vector<4x256xf32>, i32 -> vector<4x256xf32>
    %c17_i32_13 = arith.constant 17 : i32
    %13 = tpu.dynamic_rotate %10 by %c17_i32_13 dim 1 : vector<4x256xf32>, i32 -> vector<4x256xf32>
    %c0_14 = arith.constant 0 : index
    %c0_15 = arith.constant 0 : index
    %c0_16 = arith.constant 0 : index
    %14 = vector.load %arg4[%c0_14, %c0_15, %c0_16] : memref<9x4x4xf32, #tpu.memory_space<vmem>>, vector<1x4x4xf32>
    %15 = vector.shape_cast %14 : vector<1x4x4xf32> to vector<4x4xf32>
    %cst_17 = arith.constant dense<0.000000e+00> : vector<4x256xf32>
    %16 = tpu.matmul %15, %12, %cst_17 {dimension_numbers = #tpu.dot_dimension_numbers<[1], [0], [0], [1], [0, 0, 1, 1], [], []>} : vector<4x4xf32>, vector<4x256xf32>, vector<4x256xf32> -> vector<4x256xf32>
    %c0_18 = arith.constant 0 : index
    %c0_19 = arith.constant 0 : index
    %c0_20 = arith.constant 0 : index
    %17 = vector.load %arg5[%c0_18, %c0_19, %c0_20] : memref<9x4x4xf32, #tpu.memory_space<vmem>>, vector<1x4x4xf32>
    %18 = vector.shape_cast %17 : vector<1x4x4xf32> to vector<4x4xf32>
    %cst_21 = arith.constant dense<0.000000e+00> : vector<4x256xf32>
    %19 = tpu.matmul %18, %13, %cst_21 {dimension_numbers = #tpu.dot_dimension_numbers<[1], [0], [0], [1], [0, 0, 1, 1], [], []>} : vector<4x4xf32>, vector<4x256xf32>, vector<4x256xf32> -> vector<4x256xf32>
    %20 = arith.addf %16, %19 : vector<4x256xf32>
    %c0_22 = arith.constant 0 : index
    %c0_23 = arith.constant 0 : index
    %c0_24 = arith.constant 0 : index
    %21 = vector.load %arg7[%c0_22, %c0_23, %c0_24] : memref<9x1x256xf32, #tpu.memory_space<vmem>>, vector<1x1x256xf32>
    %22 = vector.shape_cast %21 : vector<1x1x256xf32> to vector<1x256xf32>
    %23 = vector.broadcast %22 : vector<1x256xf32> to vector<4x256xf32>
    %24 = arith.mulf %20, %23 : vector<4x256xf32>
    %25 = arith.addf %11, %24 : vector<4x256xf32>
    %c16_i32 = arith.constant 16 : i32
    %26 = tpu.dynamic_rotate %8 by %c16_i32 dim 1 : vector<4x256xf32>, i32 -> vector<4x256xf32>
    %c16_i32_25 = arith.constant 16 : i32
    %27 = tpu.dynamic_rotate %10 by %c16_i32_25 dim 1 : vector<4x256xf32>, i32 -> vector<4x256xf32>
    %c1 = arith.constant 1 : index
    %c0_26 = arith.constant 0 : index
    %c0_27 = arith.constant 0 : index
    %28 = vector.load %arg4[%c1, %c0_26, %c0_27] : memref<9x4x4xf32, #tpu.memory_space<vmem>>, vector<1x4x4xf32>
    %29 = vector.shape_cast %28 : vector<1x4x4xf32> to vector<4x4xf32>
    %cst_28 = arith.constant dense<0.000000e+00> : vector<4x256xf32>
    %30 = tpu.matmul %29, %26, %cst_28 {dimension_numbers = #tpu.dot_dimension_numbers<[1], [0], [0], [1], [0, 0, 1, 1], [], []>} : vector<4x4xf32>, vector<4x256xf32>, vector<4x256xf32> -> vector<4x256xf32>
    %c1_29 = arith.constant 1 : index
    %c0_30 = arith.constant 0 : index
    %c0_31 = arith.constant 0 : index
    %31 = vector.load %arg5[%c1_29, %c0_30, %c0_31] : memref<9x4x4xf32, #tpu.memory_space<vmem>>, vector<1x4x4xf32>
    %32 = vector.shape_cast %31 : vector<1x4x4xf32> to vector<4x4xf32>
    %cst_32 = arith.constant dense<0.000000e+00> : vector<4x256xf32>
    %33 = tpu.matmul %32, %27, %cst_32 {dimension_numbers = #tpu.dot_dimension_numbers<[1], [0], [0], [1], [0, 0, 1, 1], [], []>} : vector<4x4xf32>, vector<4x256xf32>, vector<4x256xf32> -> vector<4x256xf32>
    %34 = arith.addf %30, %33 : vector<4x256xf32>
    %c1_33 = arith.constant 1 : index
    %c0_34 = arith.constant 0 : index
    %c0_35 = arith.constant 0 : index
    %35 = vector.load %arg7[%c1_33, %c0_34, %c0_35] : memref<9x1x256xf32, #tpu.memory_space<vmem>>, vector<1x1x256xf32>
    %36 = vector.shape_cast %35 : vector<1x1x256xf32> to vector<1x256xf32>
    %37 = vector.broadcast %36 : vector<1x256xf32> to vector<4x256xf32>
    %38 = arith.mulf %34, %37 : vector<4x256xf32>
    %39 = arith.addf %25, %38 : vector<4x256xf32>
    %c15_i32 = arith.constant 15 : i32
    %40 = tpu.dynamic_rotate %8 by %c15_i32 dim 1 : vector<4x256xf32>, i32 -> vector<4x256xf32>
    %c15_i32_36 = arith.constant 15 : i32
    %41 = tpu.dynamic_rotate %10 by %c15_i32_36 dim 1 : vector<4x256xf32>, i32 -> vector<4x256xf32>
    %c2 = arith.constant 2 : index
    %c0_37 = arith.constant 0 : index
    %c0_38 = arith.constant 0 : index
    %42 = vector.load %arg4[%c2, %c0_37, %c0_38] : memref<9x4x4xf32, #tpu.memory_space<vmem>>, vector<1x4x4xf32>
    %43 = vector.shape_cast %42 : vector<1x4x4xf32> to vector<4x4xf32>
    %cst_39 = arith.constant dense<0.000000e+00> : vector<4x256xf32>
    %44 = tpu.matmul %43, %40, %cst_39 {dimension_numbers = #tpu.dot_dimension_numbers<[1], [0], [0], [1], [0, 0, 1, 1], [], []>} : vector<4x4xf32>, vector<4x256xf32>, vector<4x256xf32> -> vector<4x256xf32>
    %c2_40 = arith.constant 2 : index
    %c0_41 = arith.constant 0 : index
    %c0_42 = arith.constant 0 : index
    %45 = vector.load %arg5[%c2_40, %c0_41, %c0_42] : memref<9x4x4xf32, #tpu.memory_space<vmem>>, vector<1x4x4xf32>
    %46 = vector.shape_cast %45 : vector<1x4x4xf32> to vector<4x4xf32>
    %cst_43 = arith.constant dense<0.000000e+00> : vector<4x256xf32>
    %47 = tpu.matmul %46, %41, %cst_43 {dimension_numbers = #tpu.dot_dimension_numbers<[1], [0], [0], [1], [0, 0, 1, 1], [], []>} : vector<4x4xf32>, vector<4x256xf32>, vector<4x256xf32> -> vector<4x256xf32>
    %48 = arith.addf %44, %47 : vector<4x256xf32>
    %c2_44 = arith.constant 2 : index
    %c0_45 = arith.constant 0 : index
    %c0_46 = arith.constant 0 : index
    %49 = vector.load %arg7[%c2_44, %c0_45, %c0_46] : memref<9x1x256xf32, #tpu.memory_space<vmem>>, vector<1x1x256xf32>
    %50 = vector.shape_cast %49 : vector<1x1x256xf32> to vector<1x256xf32>
    %51 = vector.broadcast %50 : vector<1x256xf32> to vector<4x256xf32>
    %52 = arith.mulf %48, %51 : vector<4x256xf32>
    %53 = arith.addf %39, %52 : vector<4x256xf32>
    %c1_i32 = arith.constant 1 : i32
    %54 = tpu.dynamic_rotate %8 by %c1_i32 dim 1 : vector<4x256xf32>, i32 -> vector<4x256xf32>
    %c1_i32_47 = arith.constant 1 : i32
    %55 = tpu.dynamic_rotate %10 by %c1_i32_47 dim 1 : vector<4x256xf32>, i32 -> vector<4x256xf32>
    %c3 = arith.constant 3 : index
    %c0_48 = arith.constant 0 : index
    %c0_49 = arith.constant 0 : index
    %56 = vector.load %arg4[%c3, %c0_48, %c0_49] : memref<9x4x4xf32, #tpu.memory_space<vmem>>, vector<1x4x4xf32>
    %57 = vector.shape_cast %56 : vector<1x4x4xf32> to vector<4x4xf32>
    %cst_50 = arith.constant dense<0.000000e+00> : vector<4x256xf32>
    %58 = tpu.matmul %57, %54, %cst_50 {dimension_numbers = #tpu.dot_dimension_numbers<[1], [0], [0], [1], [0, 0, 1, 1], [], []>} : vector<4x4xf32>, vector<4x256xf32>, vector<4x256xf32> -> vector<4x256xf32>
    %c3_51 = arith.constant 3 : index
    %c0_52 = arith.constant 0 : index
    %c0_53 = arith.constant 0 : index
    %59 = vector.load %arg5[%c3_51, %c0_52, %c0_53] : memref<9x4x4xf32, #tpu.memory_space<vmem>>, vector<1x4x4xf32>
    %60 = vector.shape_cast %59 : vector<1x4x4xf32> to vector<4x4xf32>
    %cst_54 = arith.constant dense<0.000000e+00> : vector<4x256xf32>
    %61 = tpu.matmul %60, %55, %cst_54 {dimension_numbers = #tpu.dot_dimension_numbers<[1], [0], [0], [1], [0, 0, 1, 1], [], []>} : vector<4x4xf32>, vector<4x256xf32>, vector<4x256xf32> -> vector<4x256xf32>
    %62 = arith.addf %58, %61 : vector<4x256xf32>
    %c3_55 = arith.constant 3 : index
    %c0_56 = arith.constant 0 : index
    %c0_57 = arith.constant 0 : index
    %63 = vector.load %arg7[%c3_55, %c0_56, %c0_57] : memref<9x1x256xf32, #tpu.memory_space<vmem>>, vector<1x1x256xf32>
    %64 = vector.shape_cast %63 : vector<1x1x256xf32> to vector<1x256xf32>
    %65 = vector.broadcast %64 : vector<1x256xf32> to vector<4x256xf32>
    %66 = arith.mulf %62, %65 : vector<4x256xf32>
    %67 = arith.addf %53, %66 : vector<4x256xf32>
    %c4 = arith.constant 4 : index
    %c0_58 = arith.constant 0 : index
    %c0_59 = arith.constant 0 : index
    %68 = vector.load %arg4[%c4, %c0_58, %c0_59] : memref<9x4x4xf32, #tpu.memory_space<vmem>>, vector<1x4x4xf32>
    %69 = vector.shape_cast %68 : vector<1x4x4xf32> to vector<4x4xf32>
    %cst_60 = arith.constant dense<0.000000e+00> : vector<4x256xf32>
    %70 = tpu.matmul %69, %8, %cst_60 {dimension_numbers = #tpu.dot_dimension_numbers<[1], [0], [0], [1], [0, 0, 1, 1], [], []>} : vector<4x4xf32>, vector<4x256xf32>, vector<4x256xf32> -> vector<4x256xf32>
    %c4_61 = arith.constant 4 : index
    %c0_62 = arith.constant 0 : index
    %c0_63 = arith.constant 0 : index
    %71 = vector.load %arg5[%c4_61, %c0_62, %c0_63] : memref<9x4x4xf32, #tpu.memory_space<vmem>>, vector<1x4x4xf32>
    %72 = vector.shape_cast %71 : vector<1x4x4xf32> to vector<4x4xf32>
    %cst_64 = arith.constant dense<0.000000e+00> : vector<4x256xf32>
    %73 = tpu.matmul %72, %10, %cst_64 {dimension_numbers = #tpu.dot_dimension_numbers<[1], [0], [0], [1], [0, 0, 1, 1], [], []>} : vector<4x4xf32>, vector<4x256xf32>, vector<4x256xf32> -> vector<4x256xf32>
    %74 = arith.addf %70, %73 : vector<4x256xf32>
    %75 = arith.addf %67, %74 : vector<4x256xf32>
    %c255_i32 = arith.constant 255 : i32
    %76 = tpu.dynamic_rotate %8 by %c255_i32 dim 1 : vector<4x256xf32>, i32 -> vector<4x256xf32>
    %c255_i32_65 = arith.constant 255 : i32
    %77 = tpu.dynamic_rotate %10 by %c255_i32_65 dim 1 : vector<4x256xf32>, i32 -> vector<4x256xf32>
    %c5 = arith.constant 5 : index
    %c0_66 = arith.constant 0 : index
    %c0_67 = arith.constant 0 : index
    %78 = vector.load %arg4[%c5, %c0_66, %c0_67] : memref<9x4x4xf32, #tpu.memory_space<vmem>>, vector<1x4x4xf32>
    %79 = vector.shape_cast %78 : vector<1x4x4xf32> to vector<4x4xf32>
    %cst_68 = arith.constant dense<0.000000e+00> : vector<4x256xf32>
    %80 = tpu.matmul %79, %76, %cst_68 {dimension_numbers = #tpu.dot_dimension_numbers<[1], [0], [0], [1], [0, 0, 1, 1], [], []>} : vector<4x4xf32>, vector<4x256xf32>, vector<4x256xf32> -> vector<4x256xf32>
    %c5_69 = arith.constant 5 : index
    %c0_70 = arith.constant 0 : index
    %c0_71 = arith.constant 0 : index
    %81 = vector.load %arg5[%c5_69, %c0_70, %c0_71] : memref<9x4x4xf32, #tpu.memory_space<vmem>>, vector<1x4x4xf32>
    %82 = vector.shape_cast %81 : vector<1x4x4xf32> to vector<4x4xf32>
    %cst_72 = arith.constant dense<0.000000e+00> : vector<4x256xf32>
    %83 = tpu.matmul %82, %77, %cst_72 {dimension_numbers = #tpu.dot_dimension_numbers<[1], [0], [0], [1], [0, 0, 1, 1], [], []>} : vector<4x4xf32>, vector<4x256xf32>, vector<4x256xf32> -> vector<4x256xf32>
    %84 = arith.addf %80, %83 : vector<4x256xf32>
    %c5_73 = arith.constant 5 : index
    %c0_74 = arith.constant 0 : index
    %c0_75 = arith.constant 0 : index
    %85 = vector.load %arg7[%c5_73, %c0_74, %c0_75] : memref<9x1x256xf32, #tpu.memory_space<vmem>>, vector<1x1x256xf32>
    %86 = vector.shape_cast %85 : vector<1x1x256xf32> to vector<1x256xf32>
    %87 = vector.broadcast %86 : vector<1x256xf32> to vector<4x256xf32>
    %88 = arith.mulf %84, %87 : vector<4x256xf32>
    %89 = arith.addf %75, %88 : vector<4x256xf32>
    %c241_i32 = arith.constant 241 : i32
    %90 = tpu.dynamic_rotate %8 by %c241_i32 dim 1 : vector<4x256xf32>, i32 -> vector<4x256xf32>
    %c241_i32_76 = arith.constant 241 : i32
    %91 = tpu.dynamic_rotate %10 by %c241_i32_76 dim 1 : vector<4x256xf32>, i32 -> vector<4x256xf32>
    %c6 = arith.constant 6 : index
    %c0_77 = arith.constant 0 : index
    %c0_78 = arith.constant 0 : index
    %92 = vector.load %arg4[%c6, %c0_77, %c0_78] : memref<9x4x4xf32, #tpu.memory_space<vmem>>, vector<1x4x4xf32>
    %93 = vector.shape_cast %92 : vector<1x4x4xf32> to vector<4x4xf32>
    %cst_79 = arith.constant dense<0.000000e+00> : vector<4x256xf32>
    %94 = tpu.matmul %93, %90, %cst_79 {dimension_numbers = #tpu.dot_dimension_numbers<[1], [0], [0], [1], [0, 0, 1, 1], [], []>} : vector<4x4xf32>, vector<4x256xf32>, vector<4x256xf32> -> vector<4x256xf32>
    %c6_80 = arith.constant 6 : index
    %c0_81 = arith.constant 0 : index
    %c0_82 = arith.constant 0 : index
    %95 = vector.load %arg5[%c6_80, %c0_81, %c0_82] : memref<9x4x4xf32, #tpu.memory_space<vmem>>, vector<1x4x4xf32>
    %96 = vector.shape_cast %95 : vector<1x4x4xf32> to vector<4x4xf32>
    %cst_83 = arith.constant dense<0.000000e+00> : vector<4x256xf32>
    %97 = tpu.matmul %96, %91, %cst_83 {dimension_numbers = #tpu.dot_dimension_numbers<[1], [0], [0], [1], [0, 0, 1, 1], [], []>} : vector<4x4xf32>, vector<4x256xf32>, vector<4x256xf32> -> vector<4x256xf32>
    %98 = arith.addf %94, %97 : vector<4x256xf32>
    %c6_84 = arith.constant 6 : index
    %c0_85 = arith.constant 0 : index
    %c0_86 = arith.constant 0 : index
    %99 = vector.load %arg7[%c6_84, %c0_85, %c0_86] : memref<9x1x256xf32, #tpu.memory_space<vmem>>, vector<1x1x256xf32>
    %100 = vector.shape_cast %99 : vector<1x1x256xf32> to vector<1x256xf32>
    %101 = vector.broadcast %100 : vector<1x256xf32> to vector<4x256xf32>
    %102 = arith.mulf %98, %101 : vector<4x256xf32>
    %103 = arith.addf %89, %102 : vector<4x256xf32>
    %c240_i32 = arith.constant 240 : i32
    %104 = tpu.dynamic_rotate %8 by %c240_i32 dim 1 : vector<4x256xf32>, i32 -> vector<4x256xf32>
    %c240_i32_87 = arith.constant 240 : i32
    %105 = tpu.dynamic_rotate %10 by %c240_i32_87 dim 1 : vector<4x256xf32>, i32 -> vector<4x256xf32>
    %c7 = arith.constant 7 : index
    %c0_88 = arith.constant 0 : index
    %c0_89 = arith.constant 0 : index
    %106 = vector.load %arg4[%c7, %c0_88, %c0_89] : memref<9x4x4xf32, #tpu.memory_space<vmem>>, vector<1x4x4xf32>
    %107 = vector.shape_cast %106 : vector<1x4x4xf32> to vector<4x4xf32>
    %cst_90 = arith.constant dense<0.000000e+00> : vector<4x256xf32>
    %108 = tpu.matmul %107, %104, %cst_90 {dimension_numbers = #tpu.dot_dimension_numbers<[1], [0], [0], [1], [0, 0, 1, 1], [], []>} : vector<4x4xf32>, vector<4x256xf32>, vector<4x256xf32> -> vector<4x256xf32>
    %c7_91 = arith.constant 7 : index
    %c0_92 = arith.constant 0 : index
    %c0_93 = arith.constant 0 : index
    %109 = vector.load %arg5[%c7_91, %c0_92, %c0_93] : memref<9x4x4xf32, #tpu.memory_space<vmem>>, vector<1x4x4xf32>
    %110 = vector.shape_cast %109 : vector<1x4x4xf32> to vector<4x4xf32>
    %cst_94 = arith.constant dense<0.000000e+00> : vector<4x256xf32>
    %111 = tpu.matmul %110, %105, %cst_94 {dimension_numbers = #tpu.dot_dimension_numbers<[1], [0], [0], [1], [0, 0, 1, 1], [], []>} : vector<4x4xf32>, vector<4x256xf32>, vector<4x256xf32> -> vector<4x256xf32>
    %112 = arith.addf %108, %111 : vector<4x256xf32>
    %c7_95 = arith.constant 7 : index
    %c0_96 = arith.constant 0 : index
    %c0_97 = arith.constant 0 : index
    %113 = vector.load %arg7[%c7_95, %c0_96, %c0_97] : memref<9x1x256xf32, #tpu.memory_space<vmem>>, vector<1x1x256xf32>
    %114 = vector.shape_cast %113 : vector<1x1x256xf32> to vector<1x256xf32>
    %115 = vector.broadcast %114 : vector<1x256xf32> to vector<4x256xf32>
    %116 = arith.mulf %112, %115 : vector<4x256xf32>
    %117 = arith.addf %103, %116 : vector<4x256xf32>
    %c239_i32 = arith.constant 239 : i32
    %118 = tpu.dynamic_rotate %8 by %c239_i32 dim 1 : vector<4x256xf32>, i32 -> vector<4x256xf32>
    %c239_i32_98 = arith.constant 239 : i32
    %119 = tpu.dynamic_rotate %10 by %c239_i32_98 dim 1 : vector<4x256xf32>, i32 -> vector<4x256xf32>
    %c8 = arith.constant 8 : index
    %c0_99 = arith.constant 0 : index
    %c0_100 = arith.constant 0 : index
    %120 = vector.load %arg4[%c8, %c0_99, %c0_100] : memref<9x4x4xf32, #tpu.memory_space<vmem>>, vector<1x4x4xf32>
    %121 = vector.shape_cast %120 : vector<1x4x4xf32> to vector<4x4xf32>
    %cst_101 = arith.constant dense<0.000000e+00> : vector<4x256xf32>
    %122 = tpu.matmul %121, %118, %cst_101 {dimension_numbers = #tpu.dot_dimension_numbers<[1], [0], [0], [1], [0, 0, 1, 1], [], []>} : vector<4x4xf32>, vector<4x256xf32>, vector<4x256xf32> -> vector<4x256xf32>
    %c8_102 = arith.constant 8 : index
    %c0_103 = arith.constant 0 : index
    %c0_104 = arith.constant 0 : index
    %123 = vector.load %arg5[%c8_102, %c0_103, %c0_104] : memref<9x4x4xf32, #tpu.memory_space<vmem>>, vector<1x4x4xf32>
    %124 = vector.shape_cast %123 : vector<1x4x4xf32> to vector<4x4xf32>
    %cst_105 = arith.constant dense<0.000000e+00> : vector<4x256xf32>
    %125 = tpu.matmul %124, %119, %cst_105 {dimension_numbers = #tpu.dot_dimension_numbers<[1], [0], [0], [1], [0, 0, 1, 1], [], []>} : vector<4x4xf32>, vector<4x256xf32>, vector<4x256xf32> -> vector<4x256xf32>
    %126 = arith.addf %122, %125 : vector<4x256xf32>
    %c8_106 = arith.constant 8 : index
    %c0_107 = arith.constant 0 : index
    %c0_108 = arith.constant 0 : index
    %127 = vector.load %arg7[%c8_106, %c0_107, %c0_108] : memref<9x1x256xf32, #tpu.memory_space<vmem>>, vector<1x1x256xf32>
    %128 = vector.shape_cast %127 : vector<1x1x256xf32> to vector<1x256xf32>
    %129 = vector.broadcast %128 : vector<1x256xf32> to vector<4x256xf32>
    %130 = arith.mulf %126, %129 : vector<4x256xf32>
    %131 = arith.addf %117, %130 : vector<4x256xf32>
    %c0_109 = arith.constant 0 : index
    %c0_110 = arith.constant 0 : index
    %132 = vector.load %arg6[%c0_109, %c0_110] : memref<4x1xf32, #tpu.memory_space<vmem>>, vector<4x1xf32>
    %133 = vector.broadcast %132 : vector<4x1xf32> to vector<4x256xf32>
    %134 = arith.addf %131, %133 : vector<4x256xf32>
    %cst_111 = arith.constant dense<0.000000e+00> : vector<4xf32>
    %135 = vector.multi_reduction <add>, %134, %cst_111 [1] : vector<4x256xf32> to vector<4xf32>
    %136 = vector.shape_cast %135 : vector<4xf32> to vector<4x1xf32>
    %cst_112 = arith.constant 3.906250e-03 : f32
    %137 = vector.broadcast %cst_112 : f32 to vector<4x1xf32>
    %138 = arith.mulf %136, %137 : vector<4x1xf32>
    %139 = vector.broadcast %138 : vector<4x1xf32> to vector<4x256xf32>
    %140 = arith.subf %134, %139 : vector<4x256xf32>
    %141 = arith.mulf %140, %140 : vector<4x256xf32>
    %cst_113 = arith.constant dense<0.000000e+00> : vector<4xf32>
    %142 = vector.multi_reduction <add>, %141, %cst_113 [1] : vector<4x256xf32> to vector<4xf32>
    %143 = vector.shape_cast %142 : vector<4xf32> to vector<4x1xf32>
    %cst_114 = arith.constant 3.906250e-03 : f32
    %144 = vector.broadcast %cst_114 : f32 to vector<4x1xf32>
    %145 = arith.mulf %143, %144 : vector<4x1xf32>
    %cst_115 = arith.constant 9.99999974E-6 : f32
    %146 = vector.broadcast %cst_115 : f32 to vector<4x1xf32>
    %147 = arith.addf %145, %146 : vector<4x1xf32>
    %148 = math.rsqrt %147 : vector<4x1xf32>
    %149 = vector.broadcast %148 : vector<4x1xf32> to vector<4x256xf32>
    %150 = arith.mulf %140, %149 : vector<4x256xf32>
    %cst_116 = arith.constant 2.000000e-01 : f32
    %151 = vector.broadcast %cst_116 : f32 to vector<4x256xf32>
    %152 = arith.mulf %151, %150 : vector<4x256xf32>
    %153 = arith.maximumf %150, %152 : vector<4x256xf32>
    %c0_117 = arith.constant 0 : index
    %c0_118 = arith.constant 0 : index
    %c0_119 = arith.constant 0 : index
    %154 = vector.load %arg10[%c0_117, %c0_118, %c0_119] : memref<1x4x256xf32, #tpu.memory_space<vmem>>, vector<1x4x256xf32>
    %155 = vector.shape_cast %154 : vector<1x4x256xf32> to vector<4x256xf32>
    %156 = vector.shape_cast %153 : vector<4x256xf32> to vector<1x4x256xf32>
    tpu.vector_store %arg10[%c0_117, %c0_118, %c0_119], %156 {strides = array<i32>} : memref<1x4x256xf32, #tpu.memory_space<vmem>>, vector<1x4x256xf32>,
    return
  }
  func.func @transform_0(%arg0: i32) -> (i32, i32) {
    %c0_i32 = arith.constant 0 : i32
    %c0_i32_0 = arith.constant 0 : i32
    %c0_i32_1 = arith.constant 0 : i32
    return %c0_i32, %c0_i32_0 : i32, i32
  }
  func.func @transform_1(%arg0: i32) -> (i32, i32) {
    %c0_i32 = arith.constant 0 : i32
    %c0_i32_0 = arith.constant 0 : i32
    %c0_i32_1 = arith.constant 0 : i32
    return %c0_i32, %c0_i32_0 : i32, i32
  }
  func.func @transform_2(%arg0: i32) -> (i32, i32) {
    %c0_i32 = arith.constant 0 : i32
    %c0_i32_0 = arith.constant 0 : i32
    %c0_i32_1 = arith.constant 0 : i32
    return %c0_i32, %c0_i32_0 : i32, i32
  }
  func.func @transform_3(%arg0: i32) -> (i32, i32, i32) {
    %c0_i32 = arith.constant 0 : i32
    %c0_i32_0 = arith.constant 0 : i32
    %c0_i32_1 = arith.constant 0 : i32
    %c0_i32_2 = arith.constant 0 : i32
    return %c0_i32, %c0_i32_0, %c0_i32_1 : i32, i32, i32
  }
  func.func @transform_4(%arg0: i32) -> (i32, i32, i32) {
    %c0_i32 = arith.constant 0 : i32
    %c0_i32_0 = arith.constant 0 : i32
    %c0_i32_1 = arith.constant 0 : i32
    %c0_i32_2 = arith.constant 0 : i32
    return %c0_i32, %c0_i32_0, %c0_i32_1 : i32, i32, i32
  }
  func.func @transform_5(%arg0: i32) -> (i32, i32) {
    %c0_i32 = arith.constant 0 : i32
    %c0_i32_0 = arith.constant 0 : i32
    %c0_i32_1 = arith.constant 0 : i32
    return %c0_i32, %c0_i32_0 : i32, i32
  }
  func.func @transform_6(%arg0: i32) -> (i32, i32, i32) {
    %c0_i32 = arith.constant 0 : i32
    %c0_i32_0 = arith.constant 0 : i32
    %c0_i32_1 = arith.constant 0 : i32
    %c0_i32_2 = arith.constant 0 : i32
    return %c0_i32, %c0_i32_0, %c0_i32_1 : i32, i32, i32
  }
  func.func @transform_7(%arg0: i32) -> (i32, i32, i32) {
    %c0_i32 = arith.constant 0 : i32
    %c0_i32_0 = arith.constant 0 : i32
    %c0_i32_1 = arith.constant 0 : i32
    return %arg0, %c0_i32, %c0_i32_0 : i32, i32, i32
  }
  func.func @transform_8(%arg0: i32) -> (i32, i32, i32) {
    %c0_i32 = arith.constant 0 : i32
    %c0_i32_0 = arith.constant 0 : i32
    %c0_i32_1 = arith.constant 0 : i32
    return %arg0, %c0_i32, %c0_i32_0 : i32, i32, i32
  }
  func.func @transform_9(%arg0: i32) -> (i32, i32, i32) {
    %c0_i32 = arith.constant 0 : i32
    %c0_i32_0 = arith.constant 0 : i32
    %c0_i32_1 = arith.constant 0 : i32
    return %arg0, %c0_i32, %c0_i32_0 : i32, i32, i32
  }
}

</mosaic_0001>

<bundles_post_ra>
// kernel: tpu_custom_call.1
= control target key start
LH: loop header
LB: loop body
LE: loop exit
PB: predicated region body
PF: predicated region fallthrough
CT: control target
= control target key end

     0   :  { %14 = vsyncpa [#allocation3], 0  ;;  %s3165_s0 = inlined_call_operand.vmem [shape: f32[4,8], index: 0, kind: input, shape index: {}]   ;;  %s3166_s1 = inlined_call_operand.vmem [shape: f32[4,1], index: 1, kind: input, shape index: {}]   ;;  %s3167_s2 = inlined_call_operand.hbm [shape: f32[64,256], index: 2, kind: input, shape index: {}]   ;;  %s3168_s3 = inlined_call_operand.vmem [shape: f32[9,4,4], index: 3, kind: input, shape index: {}]   ;;  %s3169_s4 = inlined_call_operand.vmem [shape: f32[9,4,4], index: 4, kind: input, shape index: {}]   ;;  %s3170_s5 = inlined_call_operand.vmem [shape: f32[4,1], index: 5, kind: input, shape index: {}]   ;;  %s3171_s6 = inlined_call_operand.vmem [shape: f32[9,1,256], index: 6, kind: input, shape index: {}]   ;;  %s3172_s7 = inlined_call_operand.vmem [shape: f32[2,8,64], index: 7, kind: input, shape index: {}]   ;;  %s3173_s8 = inlined_call_operand.vmem [shape: f32[2,4,256], index: 8, kind: input, shape index: {}]   ;;  %s3174_s9 = inlined_call_operand.hbm [shape: f32[2,4,256], index: 9, kind: output, shape index: {}]  }
   0x1   :  { %15 = vsyncpa [#allocation4], 0 }
   0x2   :  { %17 = vsyncpa [#allocation4 + $0x1], 0  ;;  %s2720_s30 = smov 0   ;;  %s2722_s10 = smov 0  }
   0x3   :  { %s2724_s11 = smov 0   ;;  %s2726_s12 = smov 0  }
   0x4 LB: > { %s2741_s13 = sadd.s32 4294967295, %s2653_s12   ;;  %s2392_s14 = sadd.s32 4294967294, %s2653_s12   ;;  %s2653_s12 = sphi %s2726_s12, %s3182_s12   ;;  %s2649_s11 = sphi %s2724_s11, %s3181_s11   ;;  %s2645_s10 = sphi %s2722_s10, %s3180_s10   ;;  %s2641_s30 = sphi %s2720_s30, %s3179_s30  }
   0x5   : > { %s2745_s15 = sadd.s32 1, %s2653_s12   ;;  %s229_s16 = sadd.s32 1, %s2649_s11 }
   0x6   : > { %s226_s17 = ssub.s32 %s2653_s12, %s2745_s15  ;;  %p239_p0 = scmp.ne.s32.totalorder %s2649_s11, %s2645_s10 }
   0x7   : > { %p227_p1 = scmp.eq.s32.totalorder %s226_s17, 0  ;;  %p240_p2 = scmp.eq.s32.totalorder %s2741_s13, 1 }
   0x8   : > { %p245_p3 = scmp.ne.s32.totalorder %s2645_s10, %s2641_s30  ;;  %p246_p4 = scmp.eq.s32.totalorder %s2392_s14, 1 }
   0x9   : > { %s2756_s18 = scalar_select %p227_p1, %s2649_s11, %s229_s16  }
   0xa   : > { %p2758_p5 = por %p240_p2, %p239_p0  ;;  %p2762_p6 = por %p246_p4, %p245_p3 }
   0xb   : > { %p2393_p7 = scmp.ge.s32.totalorder %s2653_s12, 1  ;;  %p253_p8 = scmp.lt.s32.totalorder %s2653_s12, 3 }
   0xc   : > { %s3176_s20 = scalar_select %p2762_p6, 1, 0 }
   0xd   : > { %p2509_p9 = scmp.eq.s32.totalorder %s2741_s13, 0  ;;  %p2769_p10 = pnand %p2393_p7, %p253_p8 }
   0xe   : > { %s2655_s22 = smov [#allocation2]  }
   0xf   : > { %s271_s23 = sshll.u32 %s2655_s22, 4  ;;  %p2501_p11 = pneg %p2769_p10  ;;  %s272_s23 = int_to_ptr.vmem [resolvable:$true] %s271_s23 }
  0x10   : > { %s2574_s24 = scalar_lea.vmem %s272_s23, 2048  ;;  %p2582_p3 = scmp.lt.s32.totalorder %s272_s23, %s272_s23 }
  0x11   : > { %p2502_p12 = pnand %p2509_p9, %p2501_p11  ;;  %p2575_p0 = scmp.ne.s32.totalorder %s272_s23, %s2574_s24 }
  0x12   : > { %p2583_p4 = scmp.lt.s32.totalorder %s2574_s24, %s2574_s24 }
  0x13   : > { %p2565_p13 = pneg %p2502_p12 }
  0x14   : > { %p2584_p6 = por %p2583_p4, %p2582_p3 }
  0x15   : > { %p2577_p1 = pnand %p2575_p0, %p2565_p13 }
  0x17   : > { %p2578_p2 = pneg %p2577_p1 }
  0x19   : > { %p2585_p7 = pnand %p2584_p6, %p2578_p2 }
  0x1b   : > { %2588 = shalt.err (!%p2585_p7)
}
  0x1c   : > { %s2656_s25 = smov 256   ;;  %s2657_s26 = smov 16  }
  0x1d   : > { %2504 = dma.hbm_to_vmem [thread:$0]  (!%p2502_p12), %s3167_s2, 2048, %s272_s23, [#allocation3], %s2656_s25, %s2656_s25, %s2657_s26  }
  0x1e   : > { %314 = sbr.rel (%p2769_p10) target bundleno = 1118 (0x45e), region = 56 }
  0x23   : > { %2632 = dma.done.wait (%p2509_p9), [#allocation3], 2048  }
  0x24   : > { %2634 = vsyncadd (%p2509_p9), [#allocation3], 4294965248  ;;  %p354_p8 = scmp.lt.s32.totalorder %s2741_s13, 1  ;;  %v2658_v0 = vmov 0.0   ;;  %vm2659_vm0 = vmmov 0   ;;  %v2660_v1 = vmov 0   ;;  %v541_v29 = vlaneseq }
  0x25   : > { %2490 = vmatprep.subr.mxu0 %v2658_v0  ;;  %2492 = vmatprep.mubr.msk.f32.mxu0 %vm2659_vm0, %v2658_v0  ;;  %vm387_vm1 = vcmask 64512   ;;  %v363_v3 = vld [vmem:[%s3165_s0] sm:$0xf]  ;;  %v380_v5 = vld [vmem:[#allocation2 + $0x78] sm:$0xff]  ;;  %v379_v6 = vld [vmem:[#allocation2 + $0x70] sm:$0xff]  ;;  %s2661_s16 = smov 16  }
  0x26   : > { %s2790_s29 = scalar_select %p354_p8, %s2741_s13, 1  ;;  %2558 = vset.pattern.permute.xlu0 %v2660_v1  ;;  %529 = vmatprep.mubr.f32.mxu1 %v2658_v0  ;;  %v364_v4 = vld [vmem:[%s3166_s1] sm:$0xf]  ;;  %v378_v7 = vld [vmem:[#allocation2 + $0x68] sm:$0xff]  ;;  %v376_v9 = vld [vmem:[#allocation2 + $0x58] sm:$0xff]  ;;  %vm461_vm2 = vcmask 523264  }
  0x27   : > { %2559 = vset.pattern.permute.xlu1 %v2660_v1  ;;  %384 = vperm.xlu0 %2558, %v364_v4   ;;  %v377_v8 = vld [vmem:[#allocation2 + $0x60] sm:$0xff]  ;;  %v375_v10 = vld [vmem:[#allocation2 + $0x50] sm:$0xff]  ;;  %v374_v11 = vld [vmem:[#allocation2 + $0x48] sm:$0xff]  ;;  %s2662_s17 = smov 17   ;;  %s2666_s22 = smov 113   ;;  %v2843_v30 = vand.u32 127, %v541_v29 }
  0x28   : > { %s2399_s14 = sshll.u32 %s2790_s29, 3  ;;  %481 = vmatprep.subr.mxu1 %v380_v5  ;;  %v373_v12 = vld [vmem:[#allocation2 + $0x40] sm:$0xff]  ;;  %v372_v13 = vld [vmem:[#allocation2 + $0x38] sm:$0xff]  ;;  %v371_v14 = vld [vmem:[#allocation2 + $0x30] sm:$0xff]  ;;  %s2663_s29 = smov 15   ;;  %vm561_vm6 = vcmask 1043456  }
  0x29   : > { %s357_s21 = scalar_lea.vmem %s3172_s7, %s2399_s14  ;;  %482 = vmatpush1.msra.mxu1 %v379_v6  ;;  %v370_v15 = vld [vmem:[#allocation2 + $0x28] sm:$0xff]  ;;  %v369_v16 = vld [vmem:[#allocation2 + $0x20] sm:$0xff]  ;;  %v368_v17 = vld [vmem:[#allocation2 + $0x18] sm:$0xff]  ;;  %s362_s28 = scalar_lea.vmem %s3173_s8, %s2399_s14  ;;  %vm739_vm3 = vcmp.lt.s32.totalorder %v2843_v30, 16  ;;  %vm543_vm4 = vcmp.lt.s32.totalorder %v2843_v30, 17  ;;  %vm933_vm5 = vcmp.lt.s32.totalorder %v2843_v30, 15 }
  0x2a   : > { %v381_v2 = vld [vmem:[%s357_s21] sm:$0xff]  ;;  %483 = vmatprep.subr.mxu1 %v378_v7  ;;  %v367_v18 = vld [vmem:[#allocation2 + $0x10] sm:$0xff]  ;;  %v366_v19 = vld [vmem:[#allocation2 + $0x8] sm:$0xff]  ;;  %s2664_s14 = smov 1   ;;  %s2665_s21 = smov 127   ;;  %vm557_vm7 = vcmask 31744  }
  0x2b   : > { %2491 = vmatpush3.msra.mxu0 %v381_v2  ;;  %484 = vmatpush1.msra.mxu1 %v377_v8  ;;  %v2811_v20 = vld [vmem:[%s362_s28] sm:$0xff]  ;;  %v2420_v41 = vld [vmem:[%s3169_s4 + $0x8] sm:$0xf]  ;;  %vm1127_vm8 = vcmp.lt.s32.totalorder %v2843_v30, 1  ;;  %v2429_v46 = vld [vmem:[%s3169_s4 + $0xc] sm:$0xf] }
  0x2c   : > { %2493 = vmatmul.mubr.msk.f32.vlgmr.msra.gmra.mxu0 %vm387_vm1, %v363_v3  ;;  %485 = vmatprep.subr.mxu1 %v376_v9  ;;  %v365_v21 = vld [vmem:[#allocation2] sm:$0xff]  ;;  %v2817_v22 = vcombine.high %v2811_v20, %v2811_v20  ;;  %vm1485_vm9 = vcmp.lt.s32.totalorder %v2843_v30, 127  ;;  %v2438_v50 = vld [vmem:[%s3169_s4 + $0x10] sm:$0xf]  ;;  %vm1679_vm10 = vcmp.lt.s32.totalorder %v2843_v30, 113  ;;  %s2667_s23 = smov 112  }
  0x2d   : > { %632 = vmatprep.mubr.f32.mxu0 %v2658_v0  ;;  %486 = vmatpush1.msra.mxu1 %v375_v10  ;;  %v2446_v55 = vld [vmem:[%s3169_s4 + $0x14] sm:$0xf]  ;;  %v556_v57 = vld [vmem:[%s3169_s4] sm:$0xf]  ;;  %v2455_v58 = vld [vmem:[%s3169_s4 + $0x18] sm:$0xf] }
  0x2e   : > { %487 = vmatprep.subr.mxu1 %v374_v11  ;;  %742 = vrot.lane.b32.xlu1 %v2811_v20, %s2661_s16  ;;  %v2257_v61 = vld [vmem:[%s3170_s5] sm:$0xf]  ;;  %vm1873_vm11 = vcmp.lt.s32.totalorder %v2843_v30, 112  ;;  %v2411_v8 = vld [vmem:[%s3169_s4 + $0x4] sm:$0xf]  ;;  %vm2067_vm12 = vcmp.lt.s32.totalorder %v2843_v30, 111 }
  0x2f   : > { %488 = vmatpush1.msra.mxu1 %v373_v12  ;;  %549 = vrot.lane.b32.xlu0 %v2811_v20, %s2662_s17  ;;  %v555_v3 = vld [vmem:[%s3168_s3] sm:$0xf]  ;;  %v2464_v9 = vld [vmem:[%s3169_s4 + $0x1c] sm:$0xf]  ;;  %s351_s25 = sand.u32 1, %s2645_s10   ;;  %s2487_s27 = sshll.u32 %s2741_s13, 7 }
  0x30   : > { %489 = vmatprep.subr.mxu1 %v372_v13  ;;  %s2398_s26 = sshll.u32 %s351_s25, 3 }
  0x31   : > { %490 = vmatpush1.msra.mxu1 %v371_v14  ;;  %v2410_v14 = vld [vmem:[%s3168_s3 + $0x4] sm:$0xf]  ;;  %s353_s28 = scalar_lea.vmem [#allocation5], %s2398_s26 }
  0x32   : > { %491 = vmatprep.subr.mxu1 %v370_v15  ;;  %936 = vrot.lane.b32.xlu1 %v2811_v20, %s2663_s29 }
  0x33   : > { %492 = vmatpush1.msra.mxu1 %v369_v16  ;;  %744 = vrot.lane.b32.xlu0 %v2817_v22, %s2661_s16 }
  0x34   : > { %493 = vmatprep.subr.mxu1 %v368_v17 }
  0x35   : > { %494 = vmatpush1.msra.mxu1 %v367_v18 }
  0x36   : > { %495 = vmatprep.subr.mxu1 %v366_v19  ;;  %551 = vrot.lane.b32.xlu1 %v2817_v22, %s2662_s17  ;;  %v2419_v19 = vld [vmem:[%s3168_s3 + $0x8] sm:$0xf] }
  0x37   : > { %496 = vmatpush1.msra.mxu1 %v365_v21  ;;  %938 = vrot.lane.b32.xlu0 %v2817_v22, %s2663_s29 }
  0x3a   : > { %1130 = vrot.lane.b32.xlu1 %v2811_v20, %s2664_s14 }
  0x3b   : > { %1132 = vrot.lane.b32.xlu0 %v2817_v22, %s2664_s14 }
  0x3e   : > { %1488 = vrot.lane.b32.xlu1 %v2811_v20, %s2665_s21 }
  0x3f   : > { %1490 = vrot.lane.b32.xlu0 %v2817_v22, %s2665_s21 }
  0x42   : > { %1682 = vrot.lane.b32.xlu1 %v2811_v20, %s2666_s22 }
  0x43   : > { %1684 = vrot.lane.b32.xlu0 %v2817_v22, %s2666_s22 }
  0xa0   : > { %v743_v27 = vpop.permute.xlu1 %742 }
  0xa2   : > { %v385_v23 = vpop.permute.xlu0 %384 }
  0xa4   : > { %v937_v31 = vpop.permute.xlu1 %936 }
  0xa6   : > { %v550_v28 = vpop.permute.xlu0 %549 }
  0xa8   : > { %v552_v35 = vpop.permute.xlu1 %551 }
  0xa9   : > { %v553_v37 = vsel %vm543_vm4, %v550_v28, %v552_v35  ;;  %v554_v38 = vsel %vm543_vm4, %v552_v35, %v550_v28  ;;  %v2437_v28 = vld [vmem:[%s3168_s3 + $0x10] sm:$0xf]  ;;  %v2445_v35 = vld [vmem:[%s3168_s3 + $0x14] sm:$0xf] }
  0xaa   : > { %v745_v32 = vpop.permute.xlu0 %744  ;;  %2404 = vmatprep.subr.msk.mxu0 %vm561_vm6, %v553_v37 }
  0xab   : > { %v2848_v33 = vsel %vm739_vm3, %v743_v27, %v745_v32  ;;  %v2852_v34 = vsel %vm739_vm3, %v745_v32, %v743_v27  ;;  %2405 = vmatpush1.msk.msra.mxu0 %vm561_vm6, %v554_v38 }
  0xac   : > { %v1131_v42 = vpop.permute.xlu1 %1130  ;;  %2406 = vmatmul.mubr.msk.f32.vlgmr.msra.gmra.mxu0 %vm557_vm7, %v556_v57 }
  0xad   : > { %712 = vmatprep.mubr.f32.mxu0 %v2658_v0 }
  0xae   : > { %v939_v36 = vpop.permute.xlu0 %938 }
  0xaf   : > { %v940_v39 = vsel %vm933_vm5, %v937_v31, %v939_v36  ;;  %v941_v40 = vsel %vm933_vm5, %v939_v36, %v937_v31 }
  0xb0   : > { %2421 = vmatprep.subr.msk.mxu1 %vm561_vm6, %v940_v39  ;;  %v1489_v47 = vpop.permute.xlu1 %1488 }
  0xb2   : > { %v1133_v43 = vpop.permute.xlu0 %1132 }
  0xb3   : > { %v1134_v44 = vsel %vm1127_vm8, %v1131_v42, %v1133_v43  ;;  %v1135_v45 = vsel %vm1127_vm8, %v1133_v43, %v1131_v42 }
  0xb4   : > { %v1683_v52 = vpop.permute.xlu1 %1682 }
  0xb6   : > { %v1491_v48 = vpop.permute.xlu0 %1490 }
  0xb7   : > { %v1493_v49 = vsel %vm1485_vm9, %v1491_v48, %v1489_v47  ;;  %v1492_v51 = vsel %vm1485_vm9, %v1489_v47, %v1491_v48 }
  0xba   : > { %v1685_v53 = vpop.permute.xlu0 %1684 }
  0xbb   : > { %v1687_v54 = vsel %vm1679_vm10, %v1685_v53, %v1683_v52  ;;  %v1686_v56 = vsel %vm1679_vm10, %v1683_v52, %v1685_v53 }
  0xec   : > { %v457_v24 = vpop.f32.mrf.mxu0 }
  0xed   : > { %v458_v25 = vadd.f32 %v457_v24, %v385_v23  ;;  %v2428_v24 = vld [vmem:[%s3168_s3 + $0xc] sm:$0xf] }
  0xee   : > { %v2494_v26 = vpop.f32.mrf.mxu0 }
  0xef   : > { %2403 = vmatmul.mubr.msk.f32.vlgmr.msra.gmra.mxu1 %vm461_vm2, %v458_v25 }
  0xf0   : > { %1019 = vmatprep.mubr.f32.mxu1 %v2658_v0  ;;  %2422 = vmatpush1.msk.msra.mxu1 %vm561_vm6, %v941_v40  ;;  %v2454_v40 = vld [vmem:[%s3168_s3 + $0x18] sm:$0xf] }
  0xf1   : > { %2430 = vmatprep.subr.msk.mxu1 %vm561_vm6, %v1134_v44 }
  0xf3   : > { %2423 = vmatmul.mubr.msk.f32.vlgmr.msra.gmra.mxu1 %vm557_vm7, %v2420_v41 }
  0xf4   : > { %1213 = vmatprep.mubr.f32.mxu1 %v2658_v0  ;;  %2431 = vmatpush1.msk.msra.mxu1 %vm561_vm6, %v1135_v45  ;;  %v2463_v45 = vld [vmem:[%s3168_s3 + $0x1c] sm:$0xf] }
  0xf5   : > { %2439 = vmatprep.subr.msk.mxu1 %vm561_vm6, %v2817_v22 }
  0xf7   : > { %2432 = vmatmul.mubr.msk.f32.vlgmr.msra.gmra.mxu1 %vm557_vm7, %v2429_v46 }
  0xf8   : > { %2440 = vmatpush1.msk.msra.mxu1 %vm561_vm6, %v2811_v20  ;;  %1392 = vmatprep.mubr.f32.mxu1 %v2658_v0 }
  0xf9   : > { %2447 = vmatprep.subr.msk.mxu1 %vm561_vm6, %v1493_v49 }
  0xfb   : > { %2441 = vmatmul.mubr.msk.f32.vlgmr.msra.gmra.mxu1 %vm557_vm7, %v2438_v50  ;;  %v2473_v50 = vld [vmem:[%s3169_s4 + $0x20] sm:$0xf] }
  0xfc   : > { %2448 = vmatpush1.msk.msra.mxu1 %vm561_vm6, %v1492_v51  ;;  %1571 = vmatprep.mubr.f32.mxu1 %v2658_v0  ;;  %v2472_v51 = vld [vmem:[%s3168_s3 + $0x20] sm:$0xf] }
  0xfd   : > { %2456 = vmatprep.subr.msk.mxu1 %vm561_vm6, %v1687_v54 }
  0xff   : > { %2449 = vmatmul.mubr.msk.f32.vlgmr.msra.gmra.mxu1 %vm557_vm7, %v2446_v55 }
 0x100   : > { %2457 = vmatpush1.msk.msra.mxu1 %vm561_vm6, %v1686_v56  ;;  %1765 = vmatprep.mubr.f32.mxu1 %v2658_v0 }
 0x103   : > { %2458 = vmatmul.mubr.msk.f32.vlgmr.msra.gmra.mxu1 %vm557_vm7, %v2455_v58 }
 0x104   : > { %1959 = vmatprep.mubr.f32.mxu1 %v2658_v0 }
 0x16c   : > { %v634_v53 = vpop.f32.mrf.mxu0 }
 0x1af   : > { %v2923_v59 = vpop.f32.mrf.mxu1 }
 0x1b0   : > { %537 = vrot.lane.b32.xlu1 %v2923_v59, %s2662_s17 }
 0x1b1   : > { %v2927_v60 = vpop.f32.mrf.mxu1 }
 0x1b2   : > { %539 = vrot.lane.b32.xlu0 %v2927_v60, %s2662_s17 }
 0x1b3   : > { %v1021_v52 = vpop.f32.mrf.mxu1 }
 0x1b4   : > { %1876 = vrot.lane.b32.xlu1 %v2811_v20, %s2667_s23 }
 0x1b5   : > { %v1023_v54 = vpop.f32.mrf.mxu1 }
 0x1b6   : > { %1878 = vrot.lane.b32.xlu0 %v2817_v22, %s2667_s23 }
 0x1b7   : > { %v1215_v55 = vpop.f32.mrf.mxu1 }
 0x1b8   : > { %735 = vrot.lane.b32.xlu1 %v2923_v59, %s2661_s16 }
 0x1b9   : > { %v1217_v58 = vpop.f32.mrf.mxu1 }
 0x1ba   : > { %737 = vrot.lane.b32.xlu0 %v2927_v60, %s2661_s16  ;;  %s2668_s16 = smov 111  }
 0x1bc   : > { %929 = vrot.lane.b32.xlu1 %v2923_v59, %s2663_s29 }
 0x1be   : > { %931 = vrot.lane.b32.xlu0 %v2927_v60, %s2663_s29  ;;  %s2307_s29 = scalar_lea.hbm %s3174_s9, %s2487_s27 }
 0x1c0   : > { %1123 = vrot.lane.b32.xlu1 %v2923_v59, %s2664_s14 }
 0x1c2   : > { %1125 = vrot.lane.b32.xlu0 %v2927_v60, %s2664_s14  ;;  %s2295_s14 = scalar_lea.sflag [#allocation4], %s351_s25 }
 0x1c4   : > { %1481 = vrot.lane.b32.xlu1 %v2923_v59, %s2665_s21 }
 0x1c6   : > { %1483 = vrot.lane.b32.xlu0 %v2927_v60, %s2665_s21 }
 0x1c8   : > { %1675 = vrot.lane.b32.xlu1 %v2923_v59, %s2666_s22 }
 0x1ca   : > { %1677 = vrot.lane.b32.xlu0 %v2927_v60, %s2666_s22  ;;  %s2669_s22 = smov [#allocation5]  }
 0x1cb   : > { %s2593_s24 = sshll.u32 %s2669_s22, 4  ;;  %s2594_s24 = int_to_ptr.vmem [resolvable:$false] %s2593_s24 }
 0x1cc   : > { %1869 = vrot.lane.b32.xlu1 %v2923_v59, %s2667_s23  ;;  %s2595_s13 = scalar_lea.vmem %s2594_s24, 256 }
 0x1ce   : > { %1871 = vrot.lane.b32.xlu0 %v2927_v60, %s2667_s23  ;;  %s2309_s23 = sshll.u32 %s353_s28, 4  ;;  %s2310_s23 = int_to_ptr.vmem [resolvable:$true] %s2309_s23 }
 0x1cf   : > { %s2589_s21 = scalar_lea.vmem %s2310_s23, 128  ;;  %p2596_p11 = scmp.lt.s32.totalorder %s2310_s23, %s2594_s24 }
 0x1d0   : > { %2063 = vrot.lane.b32.xlu1 %v2923_v59, %s2668_s16  ;;  %p2590_p6 = scmp.ne.s32.totalorder %s2310_s23, %s2589_s21  ;;  %p2597_p12 = scmp.lt.s32.totalorder %s2595_s13, %s2589_s21 }
 0x1d2   : > { %2065 = vrot.lane.b32.xlu0 %v2927_v60, %s2668_s16  ;;  %p2591_p9 = pnand %p2590_p6, %p2758_p5  ;;  %p2598_p13 = por %p2597_p12, %p2596_p11 }
 0x1d4   : > { %2070 = vrot.lane.b32.xlu1 %v2811_v20, %s2668_s16  ;;  %p2592_p10 = pneg %p2591_p9 }
 0x1d6   : > { %2072 = vrot.lane.b32.xlu0 %v2817_v22, %s2668_s16  ;;  %p2599_p0 = pnand %p2598_p13, %p2592_p10 }
 0x1d8   : > { %2260 = vperm.xlu1 %2559, %v2257_v61   ;;  %v1394_v61 = vpop.f32.mrf.mxu1 }
 0x222   : > { %v538_v62 = vpop.permute.xlu1 %537 }
 0x224   : > { %v540_v63 = vpop.permute.xlu0 %539 }
 0x225   : > { %v544_v1 = vsel %vm543_vm4, %v538_v62, %v540_v63  ;;  %v545_v2 = vsel %vm543_vm4, %v540_v63, %v538_v62 }
 0x226   : > { %v1877_v4 = vpop.permute.xlu1 %1876  ;;  %2407 = vmatprep.subr.msk.mxu0 %vm561_vm6, %v544_v1  ;;  %v1396_v1 = vpop.f32.mrf.mxu1 }
 0x227   : > { %2408 = vmatpush1.msk.msra.mxu0 %vm561_vm6, %v545_v2  ;;  %v722_v2 = vshrl.u32 %v541_v29, 7 }
 0x228   : > { %2409 = vmatmul.mubr.msk.f32.vlgmr.msra.gmra.mxu0 %vm557_vm7, %v555_v3  ;;  %2412 = vmatprep.subr.msk.mxu0 %vm561_vm6, %v2848_v33  ;;  %v1879_v5 = vpop.permute.xlu0 %1878 }
 0x229   : > { %v1880_v6 = vsel %vm1873_vm11, %v1877_v4, %v1879_v5  ;;  %v1881_v7 = vsel %vm1873_vm11, %v1879_v5, %v1877_v4  ;;  %2413 = vmatpush1.msk.msra.mxu0 %vm561_vm6, %v2852_v34  ;;  %825 = vmatprep.mubr.f32.mxu0 %v2658_v0  ;;  %v2418_v4 = vld [vmem:[%s3171_s6 + $0x2] sm:$0x3] }
 0x22a   : > { %v736_v10 = vpop.permute.xlu1 %735  ;;  %2465 = vmatprep.subr.msk.mxu1 %vm561_vm6, %v1881_v7  ;;  %v3086_v7 = vsub.s32 0, %v722_v2 }
 0x22b   : > { %2466 = vmatpush1.msk.msra.mxu1 %vm561_vm6, %v1880_v6  ;;  %v1573_v6 = vpop.f32.mrf.mxu1 }
 0x22c   : > { %2414 = vmatmul.mubr.msk.f32.vlgmr.msra.gmra.mxu0 %vm557_vm7, %v2411_v8  ;;  %v738_v11 = vpop.permute.xlu0 %737  ;;  %2467 = vmatmul.mubr.msk.f32.vlgmr.msra.gmra.mxu1 %vm557_vm7, %v2464_v9  ;;  %v719_v8 = vld [vmem:[%s3171_s6] sm:$0x3]  ;;  %v3091_v9 = vsub.s32 1, %v722_v2 }
 0x22d   : > { %v740_v12 = vsel %vm739_vm3, %v736_v10, %v738_v11  ;;  %v741_v13 = vsel %vm739_vm3, %v738_v11, %v736_v10  ;;  %905 = vmatprep.mubr.f32.mxu0 %v2658_v0  ;;  %2153 = vmatprep.mubr.f32.mxu1 %v2658_v0  ;;  %v2427_v10 = vld [vmem:[%s3171_s6 + $0x4] sm:$0x3] }
 0x22e   : > { %v930_v15 = vpop.permute.xlu1 %929  ;;  %2415 = vmatprep.subr.msk.mxu0 %vm561_vm6, %v740_v12  ;;  %v918_v12 = vrot.slane %v2418_v4, %v3086_v7 }
 0x22f   : > { %2416 = vmatpush1.msk.msra.mxu0 %vm561_vm6, %v741_v13 }
 0x230   : > { %2417 = vmatmul.mubr.msk.f32.vlgmr.msra.gmra.mxu0 %vm557_vm7, %v2410_v14  ;;  %v932_v16 = vpop.permute.xlu0 %931  ;;  %v922_v14 = vrot.slane %v2418_v4, %v3091_v9 }
 0x231   : > { %v934_v17 = vsel %vm933_vm5, %v930_v15, %v932_v16  ;;  %v935_v18 = vsel %vm933_vm5, %v932_v16, %v930_v15  ;;  %1099 = vmatprep.mubr.f32.mxu0 %v2658_v0  ;;  %v2436_v15 = vld [vmem:[%s3171_s6 + $0x6] sm:$0x3] }
 0x232   : > { %v1124_v20 = vpop.permute.xlu1 %1123  ;;  %2424 = vmatprep.subr.msk.mxu0 %vm561_vm6, %v934_v17  ;;  %v1575_v17 = vpop.f32.mrf.mxu1 }
 0x233   : > { %2425 = vmatpush1.msk.msra.mxu0 %vm561_vm6, %v935_v18 }
 0x234   : > { %2426 = vmatmul.mubr.msk.f32.vlgmr.msra.gmra.mxu0 %vm557_vm7, %v2419_v19  ;;  %v1126_v21 = vpop.permute.xlu0 %1125  ;;  %v724_v19 = vrot.slane %v719_v8, %v3086_v7 }
 0x235   : > { %v1128_v22 = vsel %vm1127_vm8, %v1124_v20, %v1126_v21  ;;  %v1129_v23 = vsel %vm1127_vm8, %v1126_v21, %v1124_v20  ;;  %1293 = vmatprep.mubr.f32.mxu0 %v2658_v0  ;;  %v1112_v21 = vrot.slane %v2427_v10, %v3086_v7 }
 0x236   : > { %v1482_v25 = vpop.permute.xlu1 %1481  ;;  %2433 = vmatprep.subr.msk.mxu0 %vm561_vm6, %v1128_v22 }
 0x237   : > { %2434 = vmatpush1.msk.msra.mxu0 %vm561_vm6, %v1129_v23  ;;  %v728_v23 = vrot.slane %v719_v8, %v3091_v9  ;;  %v2480_v8 = vld [vmem:[%s3171_s6 + $0x10] sm:$0x3] }
 0x238   : > { %2435 = vmatmul.mubr.msk.f32.vlgmr.msra.gmra.mxu0 %vm557_vm7, %v2428_v24  ;;  %2442 = vmatprep.subr.msk.mxu0 %vm561_vm6, %v2927_v60  ;;  %v1484_v26 = vpop.permute.xlu0 %1483 }
 0x239   : > { %v1487_v27 = vsel %vm1485_vm9, %v1484_v26, %v1482_v25  ;;  %2443 = vmatpush1.msk.msra.mxu0 %vm561_vm6, %v2923_v59  ;;  %1472 = vmatprep.mubr.f32.mxu0 %v2658_v0  ;;  %v1486_v32 = vsel %vm1485_vm9, %v1482_v25, %v1484_v26  ;;  %v1116_v25 = vrot.slane %v2427_v10, %v3091_v9 }
 0x23a   : > { %v1676_v31 = vpop.permute.xlu1 %1675  ;;  %2450 = vmatprep.subr.msk.mxu0 %vm561_vm6, %v1487_v27 }
 0x23c   : > { %2444 = vmatmul.mubr.msk.f32.vlgmr.msra.gmra.mxu0 %vm557_vm7, %v2437_v28  ;;  %v1678_v33 = vpop.permute.xlu0 %1677 }
 0x23d   : > { %2451 = vmatpush1.msk.msra.mxu0 %vm561_vm6, %v1486_v32  ;;  %v1681_v34 = vsel %vm1679_vm10, %v1678_v33, %v1676_v31  ;;  %1651 = vmatprep.mubr.f32.mxu0 %v2658_v0  ;;  %v1680_v37 = vsel %vm1679_vm10, %v1676_v31, %v1678_v33  ;;  %v1306_v31 = vrot.slane %v2436_v15, %v3086_v7 }
 0x23e   : > { %v1870_v36 = vpop.permute.xlu1 %1869  ;;  %2459 = vmatprep.subr.msk.mxu0 %vm561_vm6, %v1681_v34  ;;  %v1310_v34 = vrot.slane %v2436_v15, %v3091_v9 }
 0x240   : > { %2452 = vmatmul.mubr.msk.f32.vlgmr.msra.gmra.mxu0 %vm557_vm7, %v2445_v35  ;;  %v1872_v38 = vpop.permute.xlu0 %1871 }
 0x241   : > { %2460 = vmatpush1.msk.msra.mxu0 %vm561_vm6, %v1680_v37  ;;  %v1875_v39 = vsel %vm1873_vm11, %v1872_v38, %v1870_v36  ;;  %1845 = vmatprep.mubr.f32.mxu0 %v2658_v0  ;;  %v1874_v42 = vsel %vm1873_vm11, %v1870_v36, %v1872_v38  ;;  %v1767_v36 = vpop.f32.mrf.mxu1 }
 0x242   : > { %v2064_v41 = vpop.permute.xlu1 %2063  ;;  %2468 = vmatprep.subr.msk.mxu0 %vm561_vm6, %v1875_v39 }
 0x244   : > { %2461 = vmatmul.mubr.msk.f32.vlgmr.msra.gmra.mxu0 %vm557_vm7, %v2454_v40  ;;  %v2066_v43 = vpop.permute.xlu0 %2065 }
 0x245   : > { %2469 = vmatpush1.msk.msra.mxu0 %vm561_vm6, %v1874_v42  ;;  %v2069_v44 = vsel %vm2067_vm12, %v2066_v43, %v2064_v41  ;;  %2039 = vmatprep.mubr.f32.mxu0 %v2658_v0  ;;  %v2068_v47 = vsel %vm2067_vm12, %v2064_v41, %v2066_v43  ;;  %v2453_v42 = vld [vmem:[%s3171_s6 + $0xa] sm:$0x3] }
 0x246   : > { %2477 = vmatprep.subr.msk.mxu0 %vm561_vm6, %v2069_v44  ;;  %v2071_v46 = vpop.permute.xlu1 %2070 }
 0x248   : > { %2470 = vmatmul.mubr.msk.f32.vlgmr.msra.gmra.mxu0 %vm557_vm7, %v2463_v45  ;;  %v2073_v30 = vpop.permute.xlu0 %2072  ;;  %v2462_v45 = vld [vmem:[%s3171_s6 + $0xc] sm:$0x3] }
 0x249   : > { %2478 = vmatpush1.msk.msra.mxu0 %vm561_vm6, %v2068_v47  ;;  %v2074_v48 = vsel %vm2067_vm12, %v2071_v46, %v2073_v30  ;;  %v2075_v49 = vsel %vm2067_vm12, %v2073_v30, %v2071_v46  ;;  %2233 = vmatprep.mubr.f32.mxu0 %v2658_v0  ;;  %v636_v0 = vpop.f32.mrf.mxu0 }
 0x24a   : > { %2474 = vmatprep.subr.msk.mxu1 %vm561_vm6, %v2075_v49 }
 0x24b   : > { %2475 = vmatpush1.msk.msra.mxu1 %vm561_vm6, %v2074_v48  ;;  %v1769_v48 = vpop.f32.mrf.mxu1 }
 0x24c   : > { %2476 = vmatmul.mubr.msk.f32.vlgmr.msra.gmra.mxu1 %vm557_vm7, %v2473_v50  ;;  %2479 = vmatmul.mubr.msk.f32.vlgmr.msra.gmra.mxu0 %vm557_vm7, %v2472_v51  ;;  %v1664_v51 = vrot.slane %v2453_v42, %v3086_v7 }
 0x2e8   : > { %v714_v56 = vpop.f32.mrf.mxu0 }
 0x2e9   : > { %v715_v18 = vadd.f32 %v714_v56, %v634_v53  ;;  %v1668_v53 = vrot.slane %v2453_v42, %v3091_v9 }
 0x2ea   : > { %v716_v57 = vpop.f32.mrf.mxu0 }
 0x2eb   : > { %v717_v22 = vadd.f32 %v716_v57, %v636_v0  ;;  %v731_v37 = vmul.f32 %v724_v19, %v715_v18  ;;  %v1858_v0 = vrot.slane %v2462_v45, %v3086_v7 }
 0x2ec   : > { %v827_v59 = vpop.f32.mrf.mxu0  ;;  %v1961_v2 = vpop.f32.mrf.mxu1 }
 0x2ed   : > { %v732_v39 = vmul.f32 %v728_v23, %v717_v22  ;;  %v2250_v23 = vrot.slane %v2480_v8, %v3091_v9 }
 0x2ee   : > { %v829_v60 = vpop.f32.mrf.mxu0 }
 0x2f0   : > { %v907_v62 = vpop.f32.mrf.mxu0 }
 0x2f1   : > { %v908_v11 = vadd.f32 %v907_v62, %v827_v59 }
 0x2f2   : > { %v909_v63 = vpop.f32.mrf.mxu0 }
 0x2f3   : > { %v910_v13 = vadd.f32 %v909_v63, %v829_v60  ;;  %v925_v27 = vmul.f32 %v918_v12, %v908_v11 }
 0x2f4   : > { %v1101_v3 = vpop.f32.mrf.mxu0 }
 0x2f5   : > { %v1102_v20 = vadd.f32 %v1101_v3, %v1021_v52  ;;  %v926_v32 = vmul.f32 %v922_v14, %v910_v13  ;;  %v927_v43 = vadd.f32 %v925_v27, %v731_v37  ;;  %v1963_v14 = vpop.f32.mrf.mxu1 }
 0x2f6   : > { %v1103_v5 = vpop.f32.mrf.mxu0 }
 0x2f7   : > { %v1104_v24 = vadd.f32 %v1103_v5, %v1023_v54  ;;  %v1119_v38 = vmul.f32 %v1112_v21, %v1102_v20  ;;  %v928_v46 = vadd.f32 %v926_v32, %v732_v39  ;;  %v1862_v5 = vrot.slane %v2462_v45, %v3091_v9 }
 0x2f8   : > { %v1295_v29 = vpop.f32.mrf.mxu0 }
 0x2f9   : > { %v1296_v28 = vadd.f32 %v1295_v29, %v1215_v55  ;;  %v1120_v40 = vmul.f32 %v1116_v25, %v1104_v24  ;;  %v1121_v49 = vadd.f32 %v1119_v38, %v927_v43  ;;  %v2471_v55 = vld [vmem:[%s3171_s6 + $0xe] sm:$0x3] }
 0x2fa   : > { %v1297_v16 = vpop.f32.mrf.mxu0  ;;  %v2056_v29 = vrot.slane %v2471_v55, %v3091_v9 }
 0x2fb   : > { %v1298_v33 = vadd.f32 %v1297_v16, %v1217_v58  ;;  %v1313_v44 = vmul.f32 %v1306_v31, %v1296_v28  ;;  %v1122_v52 = vadd.f32 %v1120_v40, %v928_v46  ;;  %v2246_v16 = vrot.slane %v2480_v8, %v3086_v7 }
 0x2fc   : > { %v1474_v26 = vpop.f32.mrf.mxu0 }
 0x2fd   : > { %v1314_v47 = vmul.f32 %v1310_v34, %v1298_v33  ;;  %v1315_v56 = vadd.f32 %v1313_v44, %v1121_v49  ;;  %v1475_v57 = vadd.f32 %v1474_v26, %v1394_v61 }
 0x2fe   : > { %v1476_v35 = vpop.f32.mrf.mxu0 }
 0x2ff   : > { %v1316_v60 = vadd.f32 %v1314_v47, %v1122_v52  ;;  %v1477_v62 = vadd.f32 %v1476_v35, %v1396_v1  ;;  %v1479_v61 = vadd.f32 %v1475_v57, %v1315_v56 }
 0x300   : > { %v1653_v41 = vpop.f32.mrf.mxu0 }
 0x301   : > { %v1654_v50 = vadd.f32 %v1653_v41, %v1573_v6  ;;  %v2052_v6 = vrot.slane %v2471_v55, %v3086_v7  ;;  %v1480_v1 = vadd.f32 %v1477_v62, %v1316_v60 }
 0x302   : > { %v1655_v30 = vpop.f32.mrf.mxu0 }
 0x303   : > { %v1656_v58 = vadd.f32 %v1655_v30, %v1575_v17  ;;  %v1671_v3 = vmul.f32 %v1664_v51, %v1654_v50 }
 0x304   : > { %v1847_v54 = vpop.f32.mrf.mxu0 }
 0x305   : > { %v1848_v59 = vadd.f32 %v1847_v54, %v1767_v36  ;;  %v1672_v11 = vmul.f32 %v1668_v53, %v1656_v58  ;;  %v1673_v17 = vadd.f32 %v1671_v3, %v1479_v61  ;;  %v2261_v36 = vpop.permute.xlu1 %2260 }
 0x306   : > { %v1849_v63 = vpop.f32.mrf.mxu0 }
 0x307   : > { %v1850_v4 = vadd.f32 %v1849_v63, %v1769_v48  ;;  %v1865_v12 = vmul.f32 %v1858_v0, %v1848_v59  ;;  %v1674_v24 = vadd.f32 %v1672_v11, %v1480_v1 }
 0x308   : > { %v2041_v10 = vpop.f32.mrf.mxu0 }
 0x309   : > { %v2042_v13 = vadd.f32 %v2041_v10, %v1961_v2  ;;  %v1866_v18 = vmul.f32 %v1862_v5, %v1850_v4  ;;  %v1867_v25 = vadd.f32 %v1865_v12, %v1673_v17 }
 0x30a   : > { %v2043_v15 = vpop.f32.mrf.mxu0 }
 0x30b   : > { %v2059_v19 = vmul.f32 %v2052_v6, %v2042_v13  ;;  %v2044_v20 = vadd.f32 %v2043_v15, %v1963_v14  ;;  %v1868_v32 = vadd.f32 %v1866_v18, %v1674_v24 }
 0x30c   : > { %v2155_v21 = vpop.f32.mrf.mxu1  ;;  %v2235_v22 = vpop.f32.mrf.mxu0 }
 0x30d   : > { %v2060_v26 = vmul.f32 %v2056_v29, %v2044_v20  ;;  %v2236_v27 = vadd.f32 %v2235_v22, %v2155_v21  ;;  %v2061_v33 = vadd.f32 %v2059_v19, %v1867_v25 }
 0x30e   : > { %v2157_v28 = vpop.f32.mrf.mxu1  ;;  %v2237_v31 = vpop.f32.mrf.mxu0 }
 0x30f   : > { %v2253_v34 = vmul.f32 %v2246_v16, %v2236_v27  ;;  %v2238_v35 = vadd.f32 %v2237_v31, %v2157_v28  ;;  %v2062_v7 = vadd.f32 %v2060_v26, %v1868_v32 }
 0x311   : > { %v2254_v37 = vmul.f32 %v2250_v23, %v2238_v35  ;;  %v2255_v38 = vadd.f32 %v2253_v34, %v2061_v33 }
 0x313   : > { %v2256_v39 = vadd.f32 %v2254_v37, %v2062_v7  ;;  %v2263_v40 = vadd.f32 %v2261_v36, %v2255_v38 }
 0x315   : > { %v2264_v41 = vadd.f32 %v2261_v36, %v2256_v39  ;;  %v2265_v42 = vsel %vm561_vm6, %v2263_v40, 0.0 }
 0x317   : > { %v2266_v9 = vsel %vm561_vm6, %v2264_v41, 0.0 }
 0x318   : > { %v2267_v43 = vadd.f32 %v2266_v9, %v2265_v42 }
 0x31a   : > { %2268 = vadd.xlane.f32.xlu0 %v2267_v43 }
 0x3a3   : > { %v2269_v44 = vpop.xlane.xlu0 %2268 }
 0x3a4   : > { %v2270_v45 = vmul.f32 0.00390625, %v2269_v44 }
 0x3a6   : > { %v2271_v46 = vsub.f32 %v2263_v40, %v2270_v45  ;;  %v2272_v47 = vsub.f32 %v2264_v41, %v2270_v45 }
 0x3a8   : > { %v2273_v30 = vmul.f32 %v2271_v46, %v2271_v46  ;;  %v2274_v48 = vmul.f32 %v2272_v47, %v2272_v47 }
 0x3aa   : > { %v2275_v49 = vsel %vm561_vm6, %v2273_v30, 0.0  ;;  %v2276_v50 = vsel %vm561_vm6, %v2274_v48, 0.0 }
 0x3ab   : > { %v2277_v51 = vadd.f32 %v2276_v50, %v2275_v49 }
 0x3ad   : > { %2278 = vadd.xlane.f32.xlu1 %v2277_v51 }
 0x436   : > { %v2279_v52 = vpop.xlane.xlu1 %2278 }
 0x437   : > { %v2280_v53 = vmul.f32 0.00390625, %v2279_v52 }
 0x439   : > { %v2281_v54 = vadd.f32 1e-05, %v2280_v53 }
 0x43b   : > { %2561 = vrsqrt.f32 %v2281_v54 }
 0x448   : > { %v2562_v0 = vpop.eup %2561 }
 0x449   : > { %v2283_v55 = vmul.f32 %v2562_v0, %v2271_v46  ;;  %v2284_v56 = vmul.f32 %v2562_v0, %v2272_v47 }
 0x44b   : > { %v2285_v57 = vmul.f32 0.2, %v2283_v55  ;;  %v2286_v58 = vmul.f32 0.2, %v2284_v56 }
 0x44d   : > { %v2287_v59 = vmax.f32 %v2283_v55, %v2285_v57  ;;  %v2288_v60 = vmax.f32 %v2284_v56, %v2286_v58 }
 0x44f   : > { %v2291_v62 = vcombine.low %v2287_v59, %v2288_v60 }
 0x451   : > { %2293 = vst [vmem:[%s353_s28] sm:$0xff] %v2291_v62 }
 0x452   : > { %2602 = shalt.err (!%p2599_p0)
}
 0x453   : > { %s2603_s26 = scalar_lea.hbm %s2307_s29, 128  ;;  %s2607_s28 = scalar_lea.hbm %s3174_s9, 256 }
 0x454   : > { %p2604_p1 = scmp.ne.s32.totalorder %s2307_s29, %s2603_s26  ;;  %p2608_p4 = scmp.lt.s32.totalorder %s2307_s29, %s3174_s9 }
 0x455   : > { %p2609_p7 = scmp.lt.s32.totalorder %s2607_s28, %s2603_s26 }
 0x456   : > { %p2605_p2 = pnand %p2604_p1, %p2758_p5 }
 0x457   : > { %p2610_p8 = por %p2609_p7, %p2608_p4 }
 0x458   : > { %p2606_p3 = pneg %p2605_p2 }
 0x45a   : > { %p2611_p6 = pnand %p2610_p8, %p2606_p3 }
 0x45c   : > { %2614 = shalt.err (!%p2611_p6)
}
 0x45d   : > { %2499 = dma.vmem_to_hbm [thread:$0]  (%p2758_p5), %s2310_s23, 128, %s2307_s29, %s2295_s14  }
 0x45e PF: > { %p2511_p9 = scmp.ge.s32.totalorder %s2653_s12, 2  ;;  %s2321_s21 = sand.u32 1, %s2641_s30  }
 0x45f   : > { %p3178_p10 = scmp.ne.s32.totalorder %s3176_s20, 0  ;;  %s2322_s22 = scalar_lea.sflag [#allocation4], %s2321_s21 }
 0x461   : > { %p2506_p11 = pnand %p2511_p9, %p3178_p10 }
 0x463   : > { %p2507_p12 = pneg %p2506_p11 }
 0x465   : > { %2636 = dma.done.wait (%p2507_p12), %s2322_s22, 128  }
 0x466   : > { %2638 = vsyncadd (%p2507_p12), %s2322_s22, 4294967168  ;;  %p20_p13 = scmp.ge.s32.totalorder %s2745_s15, 4   ;;  %s3179_s30 = smov %s2645_s10 }
 0x467   : > { %s3180_s10 = smov %s2649_s11  ;;  %s3181_s11 = smov %s2756_s18 }
 0x468   : > { %s3182_s12 = smov %s2745_s15  ;;  %22 = sbr.rel (!%p20_p13) target bundleno = 4 (0x4), region = 122 }
 0x46d   :  { %2327 = vsyncpa [#allocation3], 1 }
 0x46e   :  { %2329 = vsyncpa [#allocation3 + $0x1], 1 }
 0x46f   :  { %2330 = vsyncpa [#allocation4], 1 }
 0x470   :  { %2332 = vsyncpa [#allocation4 + $0x1], 1 }

</bundles_post_ra>
